<compile_context>
chip_gen: v5e
topology: v5e:2x2
jax: 0.10.0
libtpu: 0.0.40
codegen_flags: <defaults>
</compile_context>

<pallas_src>
import jax
import jax.numpy as jnp
from jax.experimental import pallas as pl
from jax.experimental.pallas import tpu as pltpu

PS = 5                              # patch size (module default ps=5)
PAD = PS // 2                       # = 2, crop pad in final_format
RGB2GRAY = (0.2989, 0.587, 0.114)   # fixed rgb2gray 1x1 conv weights
VMEM_LIMIT = 48 * 1024 * 1024       # < v7x's 64 MiB physical VMEM, raised vs v5e's 16 MiB default


def _pick_row_tile(h):
    """Row tile for the pointwise finalize kernel: full extent when small, else 256 (mult of 8)."""
    return h if h <= 256 else 256


# --------------------------------------------------------------------------- #
# Kernel 1 (per frame, grid (t,)): rescale + per-channel spatial means,
# rgb2gray + reflect-pad(1) + 3x3 bilinear (level-1 search image), and the
# normalized weight fold  wnorm = wfold / (wfold + 1e-10)  where wfold is the
# separable 5x5 zero-boundary box sum of the per-query patch weights
# (== stnls iFold of ps*ps patches of the weights, cropped by PAD).
# --------------------------------------------------------------------------- #
def _frame_prep_kernel(x_ref, w_ref, m_ref, wn_ref, s_ref, wpad_ref, gpad_ref):
    c = x_ref.shape[1]
    h, w = x_ref.shape[2], x_ref.shape[3]

    # ---- rescale + per-channel spatial mean + fixed rgb2gray (fused) ----
    gray = jnp.zeros((h, w), jnp.float32)
    for ch in range(c):
        xs = (x_ref[0, ch] - 0.5) * 2.0                  # (x - 0.5) / 0.5
        m = jnp.mean(xs, keepdims=True)                  # (1, 1) == mean((-2, -1), True)
        m_ref[0, ch] = m
        coef = RGB2GRAY[ch] if ch < 3 else 0.0
        gray = gray + coef * (xs - m)                    # fixed 1x1 conv on centered frame

    # ---- level-1 search image: reflect pad by 1 into VMEM scratch, 3x3 bilinear ----
    # torch 'reflect' (mirror without repeating the edge): row -1 -> row 1, row h -> row h-2.
    gpad_ref[1:1 + h, 1:1 + w] = gray
    gpad_ref[1:1 + h, 0:1] = gray[:, 1:2]
    gpad_ref[1:1 + h, w + 1:w + 2] = gray[:, w - 2:w - 1]
    gpad_ref[0:1, :] = gpad_ref[2:3, :]                  # top/bottom rows (incl. corners)
    gpad_ref[h + 1:h + 2, :] = gpad_ref[h - 1:h, :]
    k1 = (0.25, 0.5, 0.25)
    acc = jnp.zeros((h, w), jnp.float32)
    for u in range(3):
        for v in range(3):
            acc = acc + (k1[u] * k1[v]) * gpad_ref[u:u + h, v:v + w]
    s_ref[0, 0] = acc                                    # ::2 decimation applied by the caller

    # ---- normalized weight fold: separable gather-form box filter (reads + adds, 1 store) ----
    # wfold[i, j] = sum_{|u|<=2, |v|<=2, in-bounds} wgt[i+u, j+v]
    # (pltpu.roll would move the lane-offset reads to the XLU, but this runs once per frame
    #  on a single plane, so plain shifted reads of the zero-padded scratch are sufficient.)
    wpad_ref[...] = jnp.zeros_like(wpad_ref)
    wpad_ref[PAD:PAD + h, PAD:PAD + w] = w_ref[0, 0]
    rowsum = (wpad_ref[PAD:PAD + h, 0:w] +
              wpad_ref[PAD:PAD + h, 1:1 + w] +
              wpad_ref[PAD:PAD + h, 2:2 + w] +
              wpad_ref[PAD:PAD + h, 3:3 + w] +
              wpad_ref[PAD:PAD + h, 4:4 + w])
    wpad_ref[PAD:PAD + h, PAD:PAD + w] = rowsum          # border stays zero for the column pass
    wfold = (wpad_ref[0:h, PAD:PAD + w] +
             wpad_ref[1:1 + h, PAD:PAD + w] +
             wpad_ref[2:2 + h, PAD:PAD + w] +
             wpad_ref[3:3 + h, PAD:PAD + w] +
             wpad_ref[4:4 + h, PAD:PAD + w])
    # final_format's divide, folded into a multiplicative map via the EUP reciprocal
    wn_ref[0, 0] = wfold * pl.reciprocal(wfold + 1e-10, approx=True)


def frame_prep(noisy, weights):
    t, c, h, w = noisy.shape
    return pl.pallas_call(
        _frame_prep_kernel,
        out_shape=(jax.ShapeDtypeStruct((t, c, 1, 1), jnp.float32),   # per-channel spatial means
                   jax.ShapeDtypeStruct((t, 1, h, w), jnp.float32),   # wnorm = wfold/(wfold+eps)
                   jax.ShapeDtypeStruct((t, 1, h, w), jnp.float32)),  # smoothed search image
        grid=(t,),
        in_specs=[pl.BlockSpec((1, c, h, w), lambda i: (i, 0, 0, 0)),
                  pl.BlockSpec((1, 1, h, w), lambda i: (i, 0, 0, 0))],
        out_specs=(pl.BlockSpec((1, c, 1, 1), lambda i: (i, 0, 0, 0)),
                   pl.BlockSpec((1, 1, h, w), lambda i: (i, 0, 0, 0)),
                   pl.BlockSpec((1, 1, h, w), lambda i: (i, 0, 0, 0))),
        scratch_shapes=[pltpu.VMEM((h + 2 * PAD, w + 2 * PAD), jnp.float32),  # zero-padded weights
                        pltpu.VMEM((h + 2, w + 2), jnp.float32)],             # reflect-padded gray
        compiler_params=pltpu.CompilerParams(
            dimension_semantics=("parallel",),
            vmem_limit_bytes=VMEM_LIMIT),
    )(noisy, weights)


# --------------------------------------------------------------------------- #
# Kernel 2 (pointwise, grid (t, h_tiles)): run_parts_final + final_format +
# mean restore + rescale back, collapsed for the identity-denoiser stand-in to
#   deno = ((2*x - 1 - mean) * wnorm + mean) * 0.5 + 0.5
# --------------------------------------------------------------------------- #
def _finalize_kernel(m_ref, x_ref, wn_ref, o_ref):
    c = o_ref.shape[1]
    ti = pl.program_id(0)
    wn = wn_ref[0, 0]                                    # (th, w) normalized weight fold
    for ch in range(c):
        m = m_ref[ti, ch]                                # SMEM scalar (per-frame, per-channel mean)
        y = (x_ref[0, ch] - 0.5) * 2.0 - m               # re-derive centered frame; no y HBM trip
        # TODO(synk): with a real PatchDenoiseNet the folded image is a gather over the 25
        #             denoised patch planes; the identity stand-in collapses it to y * wfold.
        o_ref[0, ch] = (y * wn + m) * 0.5 + 0.5


def finalize(noisy, wnorm, means2d):
    t, c, h, w = noisy.shape
    th = _pick_row_tile(h)
    return pl.pallas_call(
        _finalize_kernel,
        out_shape=jax.ShapeDtypeStruct((t, c, h, w), jnp.float32),
        grid=(t, pl.cdiv(h, th)),
        in_specs=[pl.BlockSpec(memory_space=pltpu.MemorySpace.SMEM),          # means (t, c)
                  pl.BlockSpec((1, c, th, w), lambda i, j: (i, 0, j, 0)),     # noisy tile
                  pl.BlockSpec((1, 1, th, w), lambda i, j: (i, 0, j, 0))],    # wnorm tile
        out_specs=pl.BlockSpec((1, c, th, w), lambda i, j: (i, 0, j, 0)),
        compiler_params=pltpu.CompilerParams(
            dimension_semantics=("parallel", "parallel"),
            vmem_limit_bytes=VMEM_LIMIT),
    )(means2d, noisy, wnorm)


# --------------------------------------------------------------------------- #
# Forward wrapper
# --------------------------------------------------------------------------- #
@jax.jit
def batched_lidia_forward(noisy):
    t, c, h, w = noisy.shape

    # TODO(synk): PatchDenoiseNet (pdn.batched_fwd_b) stand-in — uniform per-patch weights;
    #             real weights would simply replace this array as the kernel input.
    weights = jnp.ones((t, 1, h, w), jnp.float32)

    # 1) per-frame stats + search-image prep + normalized weight fold (one fused kernel)
    means, wnorm, srch_smooth = frame_prep(noisy, weights)

    # 2) level-1 search image byproduct: 2x decimation of the bilinear-smoothed gray image
    srch_img_l1 = srch_smooth[:, :, ::2, ::2]
    del srch_img_l1  # TODO(synk): consumed by the stnls non-local search (run_nn1), which is
    #                              `raise NotImplemented` in the reference snippet.

    # 3) fused run_parts_final + final_format + mean restore + rescale back (h-tiled, pointwise)
    deno = finalize(noisy, wnorm, means.reshape(t, c))
    return deno


if __name__ == "__main__":
    key = jax.random.PRNGKey(0)
    noisy = jax.random.uniform(key, (2, 3, 16, 16), dtype=jnp.float32)

    deno = batched_lidia_forward(noisy)
    deno = jax.block_until_ready(deno)

    # sanity: identity patch denoiser + uniform weights  =>  output ~= input
    assert deno.shape == noisy.shape
    assert bool(jnp.all(jnp.isfinite(deno)))
    assert bool(jnp.allclose(deno, noisy, atol=1e-3))

    print("KERNEL_OK")
</pallas_src>

<mosaic_0001>
module attributes {stable_mosaic.version = 11 : i64} {
  func.func @_finalize_kernel(%arg0: i32, %arg1: i32, %arg2: memref<2x3xf32, #tpu.memory_space<smem>>, %arg3: memref<1x3x16x16xf32, #tpu.memory_space<vmem>>, %arg4: memref<1x1x16x16xf32, #tpu.memory_space<vmem>>, %arg5: memref<1x3x16x16xf32, #tpu.memory_space<vmem>>) attributes {dimension_semantics = [#tpu.dimension_semantics<parallel>, #tpu.dimension_semantics<parallel>], iteration_bounds = array<i64: 2, 1>, scalar_prefetch = 0 : i64, scratch_operands = 0 : i64, tpu.core_type = #tpu.core_type<tc>, window_params = [{transform_indices = @transform_0, window_bounds = array<i64: 2, 3>}, {transform_indices = @transform_1, window_bounds = array<i64: 1, 3, 16, 16>}, {transform_indices = @transform_2, window_bounds = array<i64: 1, 1, 16, 16>}, {transform_indices = @transform_3, window_bounds = array<i64: 1, 3, 16, 16>}]} {
    %c0 = arith.constant 0 : index
    %c0_0 = arith.constant 0 : index
    %c0_1 = arith.constant 0 : index
    %c0_2 = arith.constant 0 : index
    %0 = vector.load %arg4[%c0, %c0_0, %c0_1, %c0_2] : memref<1x1x16x16xf32, #tpu.memory_space<vmem>>, vector<1x1x16x16xf32>
    %1 = vector.shape_cast %0 : vector<1x1x16x16xf32> to vector<16x16xf32>
    %2 = arith.index_cast %arg0 : i32 to index
    %c0_3 = arith.constant 0 : index
    %3 = memref.load %arg2[%2, %c0_3] : memref<2x3xf32, #tpu.memory_space<smem>>
    %c0_4 = arith.constant 0 : index
    %c0_5 = arith.constant 0 : index
    %c0_6 = arith.constant 0 : index
    %c0_7 = arith.constant 0 : index
    %4 = vector.load %arg3[%c0_4, %c0_5, %c0_6, %c0_7] : memref<1x3x16x16xf32, #tpu.memory_space<vmem>>, vector<1x1x16x16xf32>
    %5 = vector.shape_cast %4 : vector<1x1x16x16xf32> to vector<16x16xf32>
    %cst = arith.constant 5.000000e-01 : f32
    %6 = vector.broadcast %cst : f32 to vector<16x16xf32>
    %7 = arith.subf %5, %6 : vector<16x16xf32>
    %cst_8 = arith.constant 2.000000e+00 : f32
    %8 = vector.broadcast %cst_8 : f32 to vector<16x16xf32>
    %9 = arith.mulf %7, %8 : vector<16x16xf32>
    %10 = vector.broadcast %3 : f32 to vector<16x16xf32>
    %11 = arith.subf %9, %10 : vector<16x16xf32>
    %12 = arith.mulf %11, %1 : vector<16x16xf32>
    %13 = vector.broadcast %3 : f32 to vector<16x16xf32>
    %14 = arith.addf %12, %13 : vector<16x16xf32>
    %cst_9 = arith.constant 5.000000e-01 : f32
    %15 = vector.broadcast %cst_9 : f32 to vector<16x16xf32>
    %16 = arith.mulf %14, %15 : vector<16x16xf32>
    %cst_10 = arith.constant 5.000000e-01 : f32
    %17 = vector.broadcast %cst_10 : f32 to vector<16x16xf32>
    %18 = arith.addf %16, %17 : vector<16x16xf32>
    %c0_11 = arith.constant 0 : index
    %c0_12 = arith.constant 0 : index
    %c0_13 = arith.constant 0 : index
    %c0_14 = arith.constant 0 : index
    %19 = vector.load %arg5[%c0_11, %c0_12, %c0_13, %c0_14] : memref<1x3x16x16xf32, #tpu.memory_space<vmem>>, vector<1x1x16x16xf32>
    %20 = vector.shape_cast %19 : vector<1x1x16x16xf32> to vector<16x16xf32>
    %21 = vector.shape_cast %18 : vector<16x16xf32> to vector<1x1x16x16xf32>
    tpu.vector_store %arg5[%c0_11, %c0_12, %c0_13, %c0_14], %21 {strides = array<i32>} : memref<1x3x16x16xf32, #tpu.memory_space<vmem>>, vector<1x1x16x16xf32>,
    %22 = arith.index_cast %arg0 : i32 to index
    %c1 = arith.constant 1 : index
    %23 = memref.load %arg2[%22, %c1] : memref<2x3xf32, #tpu.memory_space<smem>>
    %c0_15 = arith.constant 0 : index
    %c1_16 = arith.constant 1 : index
    %c0_17 = arith.constant 0 : index
    %c0_18 = arith.constant 0 : index
    %24 = vector.load %arg3[%c0_15, %c1_16, %c0_17, %c0_18] : memref<1x3x16x16xf32, #tpu.memory_space<vmem>>, vector<1x1x16x16xf32>
    %25 = vector.shape_cast %24 : vector<1x1x16x16xf32> to vector<16x16xf32>
    %cst_19 = arith.constant 5.000000e-01 : f32
    %26 = vector.broadcast %cst_19 : f32 to vector<16x16xf32>
    %27 = arith.subf %25, %26 : vector<16x16xf32>
    %cst_20 = arith.constant 2.000000e+00 : f32
    %28 = vector.broadcast %cst_20 : f32 to vector<16x16xf32>
    %29 = arith.mulf %27, %28 : vector<16x16xf32>
    %30 = vector.broadcast %23 : f32 to vector<16x16xf32>
    %31 = arith.subf %29, %30 : vector<16x16xf32>
    %32 = arith.mulf %31, %1 : vector<16x16xf32>
    %33 = vector.broadcast %23 : f32 to vector<16x16xf32>
    %34 = arith.addf %32, %33 : vector<16x16xf32>
    %cst_21 = arith.constant 5.000000e-01 : f32
    %35 = vector.broadcast %cst_21 : f32 to vector<16x16xf32>
    %36 = arith.mulf %34, %35 : vector<16x16xf32>
    %cst_22 = arith.constant 5.000000e-01 : f32
    %37 = vector.broadcast %cst_22 : f32 to vector<16x16xf32>
    %38 = arith.addf %36, %37 : vector<16x16xf32>
    %c0_23 = arith.constant 0 : index
    %c1_24 = arith.constant 1 : index
    %c0_25 = arith.constant 0 : index
    %c0_26 = arith.constant 0 : index
    %39 = vector.load %arg5[%c0_23, %c1_24, %c0_25, %c0_26] : memref<1x3x16x16xf32, #tpu.memory_space<vmem>>, vector<1x1x16x16xf32>
    %40 = vector.shape_cast %39 : vector<1x1x16x16xf32> to vector<16x16xf32>
    %41 = vector.shape_cast %38 : vector<16x16xf32> to vector<1x1x16x16xf32>
    tpu.vector_store %arg5[%c0_23, %c1_24, %c0_25, %c0_26], %41 {strides = array<i32>} : memref<1x3x16x16xf32, #tpu.memory_space<vmem>>, vector<1x1x16x16xf32>,
    %42 = arith.index_cast %arg0 : i32 to index
    %c2 = arith.constant 2 : index
    %43 = memref.load %arg2[%42, %c2] : memref<2x3xf32, #tpu.memory_space<smem>>
    %c0_27 = arith.constant 0 : index
    %c2_28 = arith.constant 2 : index
    %c0_29 = arith.constant 0 : index
    %c0_30 = arith.constant 0 : index
    %44 = vector.load %arg3[%c0_27, %c2_28, %c0_29, %c0_30] : memref<1x3x16x16xf32, #tpu.memory_space<vmem>>, vector<1x1x16x16xf32>
    %45 = vector.shape_cast %44 : vector<1x1x16x16xf32> to vector<16x16xf32>
    %cst_31 = arith.constant 5.000000e-01 : f32
    %46 = vector.broadcast %cst_31 : f32 to vector<16x16xf32>
    %47 = arith.subf %45, %46 : vector<16x16xf32>
    %cst_32 = arith.constant 2.000000e+00 : f32
    %48 = vector.broadcast %cst_32 : f32 to vector<16x16xf32>
    %49 = arith.mulf %47, %48 : vector<16x16xf32>
    %50 = vector.broadcast %43 : f32 to vector<16x16xf32>
    %51 = arith.subf %49, %50 : vector<16x16xf32>
    %52 = arith.mulf %51, %1 : vector<16x16xf32>
    %53 = vector.broadcast %43 : f32 to vector<16x16xf32>
    %54 = arith.addf %52, %53 : vector<16x16xf32>
    %cst_33 = arith.constant 5.000000e-01 : f32
    %55 = vector.broadcast %cst_33 : f32 to vector<16x16xf32>
    %56 = arith.mulf %54, %55 : vector<16x16xf32>
    %cst_34 = arith.constant 5.000000e-01 : f32
    %57 = vector.broadcast %cst_34 : f32 to vector<16x16xf32>
    %58 = arith.addf %56, %57 : vector<16x16xf32>
    %c0_35 = arith.constant 0 : index
    %c2_36 = arith.constant 2 : index
    %c0_37 = arith.constant 0 : index
    %c0_38 = arith.constant 0 : index
    %59 = vector.load %arg5[%c0_35, %c2_36, %c0_37, %c0_38] : memref<1x3x16x16xf32, #tpu.memory_space<vmem>>, vector<1x1x16x16xf32>
    %60 = vector.shape_cast %59 : vector<1x1x16x16xf32> to vector<16x16xf32>
    %61 = vector.shape_cast %58 : vector<16x16xf32> to vector<1x1x16x16xf32>
    tpu.vector_store %arg5[%c0_35, %c2_36, %c0_37, %c0_38], %61 {strides = array<i32>} : memref<1x3x16x16xf32, #tpu.memory_space<vmem>>, vector<1x1x16x16xf32>,
    return
  }
  func.func @transform_0(%arg0: i32, %arg1: i32) -> (i32, i32) {
    %c0_i32 = arith.constant 0 : i32
    %c0_i32_0 = arith.constant 0 : i32
    %c0_i32_1 = arith.constant 0 : i32
    return %c0_i32, %c0_i32_0 : i32, i32
  }
  func.func @transform_1(%arg0: i32, %arg1: i32) -> (i32, i32, i32, i32) {
    %c0_i32 = arith.constant 0 : i32
    %c0_i32_0 = arith.constant 0 : i32
    %c0_i32_1 = arith.constant 0 : i32
    return %arg0, %c0_i32, %arg1, %c0_i32_0 : i32, i32, i32, i32
  }
  func.func @transform_2(%arg0: i32, %arg1: i32) -> (i32, i32, i32, i32) {
    %c0_i32 = arith.constant 0 : i32
    %c0_i32_0 = arith.constant 0 : i32
    %c0_i32_1 = arith.constant 0 : i32
    return %arg0, %c0_i32, %arg1, %c0_i32_0 : i32, i32, i32, i32
  }
  func.func @transform_3(%arg0: i32, %arg1: i32) -> (i32, i32, i32, i32) {
    %c0_i32 = arith.constant 0 : i32
    %c0_i32_0 = arith.constant 0 : i32
    %c0_i32_1 = arith.constant 0 : i32
    return %arg0, %c0_i32, %arg1, %c0_i32_0 : i32, i32, i32, i32
  }
}

module attributes {stable_mosaic.version = 11 : i64} {
  func.func @_frame_prep_kernel(%arg0: i32, %arg1: memref<1x3x16x16xf32, #tpu.memory_space<vmem>>, %arg2: memref<1x1x16x16xf32, #tpu.memory_space<vmem>>, %arg3: memref<1x3x1x1xf32, #tpu.memory_space<vmem>>, %arg4: memref<1x1x16x16xf32, #tpu.memory_space<vmem>>, %arg5: memref<1x1x16x16xf32, #tpu.memory_space<vmem>>, %arg6: memref<20x20xf32, #tpu.memory_space<vmem>>, %arg7: memref<18x18xf32, #tpu.memory_space<vmem>>) attributes {dimension_semantics = [#tpu.dimension_semantics<parallel>], iteration_bounds = array<i64: 2>, scalar_prefetch = 0 : i64, scratch_operands = 2 : i64, tpu.core_type = #tpu.core_type<tc>, window_params = [{transform_indices = @transform_0, window_bounds = array<i64: 1, 3, 16, 16>}, {transform_indices = @transform_1, window_bounds = array<i64: 1, 1, 16, 16>}, {transform_indices = @transform_2, window_bounds = array<i64: 1, 3, 1, 1>}, {transform_indices = @transform_3, window_bounds = array<i64: 1, 1, 16, 16>}, {transform_indices = @transform_4, window_bounds = array<i64: 1, 1, 16, 16>}]} {
    %cst = arith.constant 0.000000e+00 : f32
    %0 = vector.broadcast %cst : f32 to vector<16x16xf32>
    %c0 = arith.constant 0 : index
    %c0_0 = arith.constant 0 : index
    %c0_1 = arith.constant 0 : index
    %c0_2 = arith.constant 0 : index
    %1 = vector.load %arg1[%c0, %c0_0, %c0_1, %c0_2] : memref<1x3x16x16xf32, #tpu.memory_space<vmem>>, vector<1x1x16x16xf32>
    %2 = vector.shape_cast %1 : vector<1x1x16x16xf32> to vector<16x16xf32>
    %cst_3 = arith.constant 5.000000e-01 : f32
    %3 = vector.broadcast %cst_3 : f32 to vector<16x16xf32>
    %4 = arith.subf %2, %3 : vector<16x16xf32>
    %cst_4 = arith.constant 2.000000e+00 : f32
    %5 = vector.broadcast %cst_4 : f32 to vector<16x16xf32>
    %6 = arith.mulf %4, %5 : vector<16x16xf32>
    %7 = vector.shape_cast %6 : vector<16x16xf32> to vector<1x16x16xf32>
    %cst_5 = arith.constant dense<0.000000e+00> : vector<1xf32>
    %8 = vector.multi_reduction <add>, %7, %cst_5 [1, 2] : vector<1x16x16xf32> to vector<1xf32>
    %9 = vector.shape_cast %8 : vector<1xf32> to vector<1x1x1xf32>
    %10 = vector.extract %9[0, 0, 0] : f32 from vector<1x1x1xf32>
    %11 = vector.broadcast %10 : f32 to vector<1x1xf32>
    %cst_6 = arith.constant 2.560000e+02 : f32
    %12 = vector.broadcast %cst_6 : f32 to vector<1x1xf32>
    %13 = arith.divf %11, %12 : vector<1x1xf32>
    %c0_7 = arith.constant 0 : index
    %c0_8 = arith.constant 0 : index
    %c0_9 = arith.constant 0 : index
    %c0_10 = arith.constant 0 : index
    %14 = vector.load %arg3[%c0_7, %c0_8, %c0_9, %c0_10] : memref<1x3x1x1xf32, #tpu.memory_space<vmem>>, vector<1x1x1x1xf32>
    %15 = vector.shape_cast %14 : vector<1x1x1x1xf32> to vector<1x1xf32>
    %16 = vector.shape_cast %13 : vector<1x1xf32> to vector<1x1x1x1xf32>
    tpu.vector_store %arg3[%c0_7, %c0_8, %c0_9, %c0_10], %16 {strides = array<i32>} : memref<1x3x1x1xf32, #tpu.memory_space<vmem>>, vector<1x1x1x1xf32>,
    %17 = vector.broadcast %13 : vector<1x1xf32> to vector<16x16xf32>
    %18 = arith.subf %6, %17 : vector<16x16xf32>
    %cst_11 = arith.constant 2.989000e-01 : f32
    %19 = vector.broadcast %cst_11 : f32 to vector<16x16xf32>
    %20 = arith.mulf %19, %18 : vector<16x16xf32>
    %21 = arith.addf %0, %20 : vector<16x16xf32>
    %c0_12 = arith.constant 0 : index
    %c1 = arith.constant 1 : index
    %c0_13 = arith.constant 0 : index
    %c0_14 = arith.constant 0 : index
    %22 = vector.load %arg1[%c0_12, %c1, %c0_13, %c0_14] : memref<1x3x16x16xf32, #tpu.memory_space<vmem>>, vector<1x1x16x16xf32>
    %23 = vector.shape_cast %22 : vector<1x1x16x16xf32> to vector<16x16xf32>
    %cst_15 = arith.constant 5.000000e-01 : f32
    %24 = vector.broadcast %cst_15 : f32 to vector<16x16xf32>
    %25 = arith.subf %23, %24 : vector<16x16xf32>
    %cst_16 = arith.constant 2.000000e+00 : f32
    %26 = vector.broadcast %cst_16 : f32 to vector<16x16xf32>
    %27 = arith.mulf %25, %26 : vector<16x16xf32>
    %28 = vector.shape_cast %27 : vector<16x16xf32> to vector<1x16x16xf32>
    %cst_17 = arith.constant dense<0.000000e+00> : vector<1xf32>
    %29 = vector.multi_reduction <add>, %28, %cst_17 [1, 2] : vector<1x16x16xf32> to vector<1xf32>
    %30 = vector.shape_cast %29 : vector<1xf32> to vector<1x1x1xf32>
    %31 = vector.extract %30[0, 0, 0] : f32 from vector<1x1x1xf32>
    %32 = vector.broadcast %31 : f32 to vector<1x1xf32>
    %cst_18 = arith.constant 2.560000e+02 : f32
    %33 = vector.broadcast %cst_18 : f32 to vector<1x1xf32>
    %34 = arith.divf %32, %33 : vector<1x1xf32>
    %c0_19 = arith.constant 0 : index
    %c1_20 = arith.constant 1 : index
    %c0_21 = arith.constant 0 : index
    %c0_22 = arith.constant 0 : index
    %35 = vector.load %arg3[%c0_19, %c1_20, %c0_21, %c0_22] : memref<1x3x1x1xf32, #tpu.memory_space<vmem>>, vector<1x1x1x1xf32>
    %36 = vector.shape_cast %35 : vector<1x1x1x1xf32> to vector<1x1xf32>
    %37 = vector.shape_cast %34 : vector<1x1xf32> to vector<1x1x1x1xf32>
    tpu.vector_store %arg3[%c0_19, %c1_20, %c0_21, %c0_22], %37 {strides = array<i32>} : memref<1x3x1x1xf32, #tpu.memory_space<vmem>>, vector<1x1x1x1xf32>,
    %38 = vector.broadcast %34 : vector<1x1xf32> to vector<16x16xf32>
    %39 = arith.subf %27, %38 : vector<16x16xf32>
    %cst_23 = arith.constant 5.870000e-01 : f32
    %40 = vector.broadcast %cst_23 : f32 to vector<16x16xf32>
    %41 = arith.mulf %40, %39 : vector<16x16xf32>
    %42 = arith.addf %21, %41 : vector<16x16xf32>
    %c0_24 = arith.constant 0 : index
    %c2 = arith.constant 2 : index
    %c0_25 = arith.constant 0 : index
    %c0_26 = arith.constant 0 : index
    %43 = vector.load %arg1[%c0_24, %c2, %c0_25, %c0_26] : memref<1x3x16x16xf32, #tpu.memory_space<vmem>>, vector<1x1x16x16xf32>
    %44 = vector.shape_cast %43 : vector<1x1x16x16xf32> to vector<16x16xf32>
    %cst_27 = arith.constant 5.000000e-01 : f32
    %45 = vector.broadcast %cst_27 : f32 to vector<16x16xf32>
    %46 = arith.subf %44, %45 : vector<16x16xf32>
    %cst_28 = arith.constant 2.000000e+00 : f32
    %47 = vector.broadcast %cst_28 : f32 to vector<16x16xf32>
    %48 = arith.mulf %46, %47 : vector<16x16xf32>
    %49 = vector.shape_cast %48 : vector<16x16xf32> to vector<1x16x16xf32>
    %cst_29 = arith.constant dense<0.000000e+00> : vector<1xf32>
    %50 = vector.multi_reduction <add>, %49, %cst_29 [1, 2] : vector<1x16x16xf32> to vector<1xf32>
    %51 = vector.shape_cast %50 : vector<1xf32> to vector<1x1x1xf32>
    %52 = vector.extract %51[0, 0, 0] : f32 from vector<1x1x1xf32>
    %53 = vector.broadcast %52 : f32 to vector<1x1xf32>
    %cst_30 = arith.constant 2.560000e+02 : f32
    %54 = vector.broadcast %cst_30 : f32 to vector<1x1xf32>
    %55 = arith.divf %53, %54 : vector<1x1xf32>
    %c0_31 = arith.constant 0 : index
    %c2_32 = arith.constant 2 : index
    %c0_33 = arith.constant 0 : index
    %c0_34 = arith.constant 0 : index
    %56 = vector.load %arg3[%c0_31, %c2_32, %c0_33, %c0_34] : memref<1x3x1x1xf32, #tpu.memory_space<vmem>>, vector<1x1x1x1xf32>
    %57 = vector.shape_cast %56 : vector<1x1x1x1xf32> to vector<1x1xf32>
    %58 = vector.shape_cast %55 : vector<1x1xf32> to vector<1x1x1x1xf32>
    tpu.vector_store %arg3[%c0_31, %c2_32, %c0_33, %c0_34], %58 {strides = array<i32>} : memref<1x3x1x1xf32, #tpu.memory_space<vmem>>, vector<1x1x1x1xf32>,
    %59 = vector.broadcast %55 : vector<1x1xf32> to vector<16x16xf32>
    %60 = arith.subf %48, %59 : vector<16x16xf32>
    %cst_35 = arith.constant 1.140000e-01 : f32
    %61 = vector.broadcast %cst_35 : f32 to vector<16x16xf32>
    %62 = arith.mulf %61, %60 : vector<16x16xf32>
    %63 = arith.addf %42, %62 : vector<16x16xf32>
    %c1_36 = arith.constant 1 : index
    %c1_37 = arith.constant 1 : index
    %64 = vector.load %arg7[%c1_36, %c1_37] : memref<18x18xf32, #tpu.memory_space<vmem>>, vector<16x16xf32>
    tpu.vector_store %arg7[%c1_36, %c1_37], %63 {strides = array<i32>} : memref<18x18xf32, #tpu.memory_space<vmem>>, vector<16x16xf32>,
    %65 = vector.extract_strided_slice %63 {offsets = [0, 1], sizes = [16, 1], strides = [1, 1]} : vector<16x16xf32> to vector<16x1xf32>
    %c1_38 = arith.constant 1 : index
    %c0_39 = arith.constant 0 : index
    %66 = vector.load %arg7[%c1_38, %c0_39] : memref<18x18xf32, #tpu.memory_space<vmem>>, vector<16x1xf32>
    tpu.vector_store %arg7[%c1_38, %c0_39], %65 {strides = array<i32>} : memref<18x18xf32, #tpu.memory_space<vmem>>, vector<16x1xf32>,
    %67 = vector.extract_strided_slice %63 {offsets = [0, 14], sizes = [16, 1], strides = [1, 1]} : vector<16x16xf32> to vector<16x1xf32>
    %c1_40 = arith.constant 1 : index
    %c17 = arith.constant 17 : index
    %68 = vector.load %arg7[%c1_40, %c17] : memref<18x18xf32, #tpu.memory_space<vmem>>, vector<16x1xf32>
    tpu.vector_store %arg7[%c1_40, %c17], %67 {strides = array<i32>} : memref<18x18xf32, #tpu.memory_space<vmem>>, vector<16x1xf32>,
    %c2_41 = arith.constant 2 : index
    %c0_42 = arith.constant 0 : index
    %69 = vector.load %arg7[%c2_41, %c0_42] : memref<18x18xf32, #tpu.memory_space<vmem>>, vector<1x18xf32>
    %c0_43 = arith.constant 0 : index
    %c0_44 = arith.constant 0 : index
    %70 = vector.load %arg7[%c0_43, %c0_44] : memref<18x18xf32, #tpu.memory_space<vmem>>, vector<1x18xf32>
    tpu.vector_store %arg7[%c0_43, %c0_44], %69 {strides = array<i32>} : memref<18x18xf32, #tpu.memory_space<vmem>>, vector<1x18xf32>,
    %c15 = arith.constant 15 : index
    %c0_45 = arith.constant 0 : index
    %71 = vector.load %arg7[%c15, %c0_45] : memref<18x18xf32, #tpu.memory_space<vmem>>, vector<1x18xf32>
    %c17_46 = arith.constant 17 : index
    %c0_47 = arith.constant 0 : index
    %72 = vector.load %arg7[%c17_46, %c0_47] : memref<18x18xf32, #tpu.memory_space<vmem>>, vector<1x18xf32>
    tpu.vector_store %arg7[%c17_46, %c0_47], %71 {strides = array<i32>} : memref<18x18xf32, #tpu.memory_space<vmem>>, vector<1x18xf32>,
    %cst_48 = arith.constant 0.000000e+00 : f32
    %73 = vector.broadcast %cst_48 : f32 to vector<16x16xf32>
    %c0_49 = arith.constant 0 : index
    %c0_50 = arith.constant 0 : index
    %74 = vector.load %arg7[%c0_49, %c0_50] : memref<18x18xf32, #tpu.memory_space<vmem>>, vector<16x16xf32>
    %cst_51 = arith.constant 6.250000e-02 : f32
    %75 = vector.broadcast %cst_51 : f32 to vector<16x16xf32>
    %76 = arith.mulf %75, %74 : vector<16x16xf32>
    %77 = arith.addf %73, %76 : vector<16x16xf32>
    %c0_52 = arith.constant 0 : index
    %c1_53 = arith.constant 1 : index
    %78 = vector.load %arg7[%c0_52, %c1_53] : memref<18x18xf32, #tpu.memory_space<vmem>>, vector<16x16xf32>
    %cst_54 = arith.constant 1.250000e-01 : f32
    %79 = vector.broadcast %cst_54 : f32 to vector<16x16xf32>
    %80 = arith.mulf %79, %78 : vector<16x16xf32>
    %81 = arith.addf %77, %80 : vector<16x16xf32>
    %c0_55 = arith.constant 0 : index
    %c2_56 = arith.constant 2 : index
    %82 = vector.load %arg7[%c0_55, %c2_56] : memref<18x18xf32, #tpu.memory_space<vmem>>, vector<16x16xf32>
    %cst_57 = arith.constant 6.250000e-02 : f32
    %83 = vector.broadcast %cst_57 : f32 to vector<16x16xf32>
    %84 = arith.mulf %83, %82 : vector<16x16xf32>
    %85 = arith.addf %81, %84 : vector<16x16xf32>
    %c1_58 = arith.constant 1 : index
    %c0_59 = arith.constant 0 : index
    %86 = vector.load %arg7[%c1_58, %c0_59] : memref<18x18xf32, #tpu.memory_space<vmem>>, vector<16x16xf32>
    %cst_60 = arith.constant 1.250000e-01 : f32
    %87 = vector.broadcast %cst_60 : f32 to vector<16x16xf32>
    %88 = arith.mulf %87, %86 : vector<16x16xf32>
    %89 = arith.addf %85, %88 : vector<16x16xf32>
    %c1_61 = arith.constant 1 : index
    %c1_62 = arith.constant 1 : index
    %90 = vector.load %arg7[%c1_61, %c1_62] : memref<18x18xf32, #tpu.memory_space<vmem>>, vector<16x16xf32>
    %cst_63 = arith.constant 2.500000e-01 : f32
    %91 = vector.broadcast %cst_63 : f32 to vector<16x16xf32>
    %92 = arith.mulf %91, %90 : vector<16x16xf32>
    %93 = arith.addf %89, %92 : vector<16x16xf32>
    %c1_64 = arith.constant 1 : index
    %c2_65 = arith.constant 2 : index
    %94 = vector.load %arg7[%c1_64, %c2_65] : memref<18x18xf32, #tpu.memory_space<vmem>>, vector<16x16xf32>
    %cst_66 = arith.constant 1.250000e-01 : f32
    %95 = vector.broadcast %cst_66 : f32 to vector<16x16xf32>
    %96 = arith.mulf %95, %94 : vector<16x16xf32>
    %97 = arith.addf %93, %96 : vector<16x16xf32>
    %c2_67 = arith.constant 2 : index
    %c0_68 = arith.constant 0 : index
    %98 = vector.load %arg7[%c2_67, %c0_68] : memref<18x18xf32, #tpu.memory_space<vmem>>, vector<16x16xf32>
    %cst_69 = arith.constant 6.250000e-02 : f32
    %99 = vector.broadcast %cst_69 : f32 to vector<16x16xf32>
    %100 = arith.mulf %99, %98 : vector<16x16xf32>
    %101 = arith.addf %97, %100 : vector<16x16xf32>
    %c2_70 = arith.constant 2 : index
    %c1_71 = arith.constant 1 : index
    %102 = vector.load %arg7[%c2_70, %c1_71] : memref<18x18xf32, #tpu.memory_space<vmem>>, vector<16x16xf32>
    %cst_72 = arith.constant 1.250000e-01 : f32
    %103 = vector.broadcast %cst_72 : f32 to vector<16x16xf32>
    %104 = arith.mulf %103, %102 : vector<16x16xf32>
    %105 = arith.addf %101, %104 : vector<16x16xf32>
    %c2_73 = arith.constant 2 : index
    %c2_74 = arith.constant 2 : index
    %106 = vector.load %arg7[%c2_73, %c2_74] : memref<18x18xf32, #tpu.memory_space<vmem>>, vector<16x16xf32>
    %cst_75 = arith.constant 6.250000e-02 : f32
    %107 = vector.broadcast %cst_75 : f32 to vector<16x16xf32>
    %108 = arith.mulf %107, %106 : vector<16x16xf32>
    %109 = arith.addf %105, %108 : vector<16x16xf32>
    %c0_76 = arith.constant 0 : index
    %c0_77 = arith.constant 0 : index
    %c0_78 = arith.constant 0 : index
    %c0_79 = arith.constant 0 : index
    %110 = vector.load %arg5[%c0_76, %c0_77, %c0_78, %c0_79] : memref<1x1x16x16xf32, #tpu.memory_space<vmem>>, vector<1x1x16x16xf32>
    %111 = vector.shape_cast %110 : vector<1x1x16x16xf32> to vector<16x16xf32>
    %112 = vector.shape_cast %109 : vector<16x16xf32> to vector<1x1x16x16xf32>
    tpu.vector_store %arg5[%c0_76, %c0_77, %c0_78, %c0_79], %112 {strides = array<i32>} : memref<1x1x16x16xf32, #tpu.memory_space<vmem>>, vector<1x1x16x16xf32>,
    %cst_80 = arith.constant 0.000000e+00 : f32
    %113 = vector.broadcast %cst_80 : f32 to vector<20x20xf32>
    %c0_81 = arith.constant 0 : index
    %c0_82 = arith.constant 0 : index
    %114 = vector.load %arg6[%c0_81, %c0_82] : memref<20x20xf32, #tpu.memory_space<vmem>>, vector<20x20xf32>
    tpu.vector_store %arg6[%c0_81, %c0_82], %113 {strides = array<i32>} : memref<20x20xf32, #tpu.memory_space<vmem>>, vector<20x20xf32>,
    %c0_83 = arith.constant 0 : index
    %c0_84 = arith.constant 0 : index
    %c0_85 = arith.constant 0 : index
    %c0_86 = arith.constant 0 : index
    %115 = vector.load %arg2[%c0_83, %c0_84, %c0_85, %c0_86] : memref<1x1x16x16xf32, #tpu.memory_space<vmem>>, vector<1x1x16x16xf32>
    %116 = vector.shape_cast %115 : vector<1x1x16x16xf32> to vector<16x16xf32>
    %c2_87 = arith.constant 2 : index
    %c2_88 = arith.constant 2 : index
    %117 = vector.load %arg6[%c2_87, %c2_88] : memref<20x20xf32, #tpu.memory_space<vmem>>, vector<16x16xf32>
    tpu.vector_store %arg6[%c2_87, %c2_88], %116 {strides = array<i32>} : memref<20x20xf32, #tpu.memory_space<vmem>>, vector<16x16xf32>,
    %c2_89 = arith.constant 2 : index
    %c0_90 = arith.constant 0 : index
    %118 = vector.load %arg6[%c2_89, %c0_90] : memref<20x20xf32, #tpu.memory_space<vmem>>, vector<16x16xf32>
    %c2_91 = arith.constant 2 : index
    %c1_92 = arith.constant 1 : index
    %119 = vector.load %arg6[%c2_91, %c1_92] : memref<20x20xf32, #tpu.memory_space<vmem>>, vector<16x16xf32>
    %120 = arith.addf %118, %119 : vector<16x16xf32>
    %c2_93 = arith.constant 2 : index
    %c2_94 = arith.constant 2 : index
    %121 = vector.load %arg6[%c2_93, %c2_94] : memref<20x20xf32, #tpu.memory_space<vmem>>, vector<16x16xf32>
    %122 = arith.addf %120, %121 : vector<16x16xf32>
    %c2_95 = arith.constant 2 : index
    %c3 = arith.constant 3 : index
    %123 = vector.load %arg6[%c2_95, %c3] : memref<20x20xf32, #tpu.memory_space<vmem>>, vector<16x16xf32>
    %124 = arith.addf %122, %123 : vector<16x16xf32>
    %c2_96 = arith.constant 2 : index
    %c4 = arith.constant 4 : index
    %125 = vector.load %arg6[%c2_96, %c4] : memref<20x20xf32, #tpu.memory_space<vmem>>, vector<16x16xf32>
    %126 = arith.addf %124, %125 : vector<16x16xf32>
    %c2_97 = arith.constant 2 : index
    %c2_98 = arith.constant 2 : index
    %127 = vector.load %arg6[%c2_97, %c2_98] : memref<20x20xf32, #tpu.memory_space<vmem>>, vector<16x16xf32>
    tpu.vector_store %arg6[%c2_97, %c2_98], %126 {strides = array<i32>} : memref<20x20xf32, #tpu.memory_space<vmem>>, vector<16x16xf32>,
    %c0_99 = arith.constant 0 : index
    %c2_100 = arith.constant 2 : index
    %128 = vector.load %arg6[%c0_99, %c2_100] : memref<20x20xf32, #tpu.memory_space<vmem>>, vector<16x16xf32>
    %c1_101 = arith.constant 1 : index
    %c2_102 = arith.constant 2 : index
    %129 = vector.load %arg6[%c1_101, %c2_102] : memref<20x20xf32, #tpu.memory_space<vmem>>, vector<16x16xf32>
    %130 = arith.addf %128, %129 : vector<16x16xf32>
    %c2_103 = arith.constant 2 : index
    %c2_104 = arith.constant 2 : index
    %131 = vector.load %arg6[%c2_103, %c2_104] : memref<20x20xf32, #tpu.memory_space<vmem>>, vector<16x16xf32>
    %132 = arith.addf %130, %131 : vector<16x16xf32>
    %c3_105 = arith.constant 3 : index
    %c2_106 = arith.constant 2 : index
    %133 = vector.load %arg6[%c3_105, %c2_106] : memref<20x20xf32, #tpu.memory_space<vmem>>, vector<16x16xf32>
    %134 = arith.addf %132, %133 : vector<16x16xf32>
    %c4_107 = arith.constant 4 : index
    %c2_108 = arith.constant 2 : index
    %135 = vector.load %arg6[%c4_107, %c2_108] : memref<20x20xf32, #tpu.memory_space<vmem>>, vector<16x16xf32>
    %136 = arith.addf %134, %135 : vector<16x16xf32>
    %cst_109 = arith.constant 1.000000e-10 : f32
    %137 = vector.broadcast %cst_109 : f32 to vector<16x16xf32>
    %138 = arith.addf %136, %137 : vector<16x16xf32>
    %139 = tpu.reciprocal %138 {approx = true} : vector<16x16xf32> -> vector<16x16xf32>
    %140 = arith.mulf %136, %139 : vector<16x16xf32>
    %c0_110 = arith.constant 0 : index
    %c0_111 = arith.constant 0 : index
    %c0_112 = arith.constant 0 : index
    %c0_113 = arith.constant 0 : index
    %141 = vector.load %arg4[%c0_110, %c0_111, %c0_112, %c0_113] : memref<1x1x16x16xf32, #tpu.memory_space<vmem>>, vector<1x1x16x16xf32>
    %142 = vector.shape_cast %141 : vector<1x1x16x16xf32> to vector<16x16xf32>
    %143 = vector.shape_cast %140 : vector<16x16xf32> to vector<1x1x16x16xf32>
    tpu.vector_store %arg4[%c0_110, %c0_111, %c0_112, %c0_113], %143 {strides = array<i32>} : memref<1x1x16x16xf32, #tpu.memory_space<vmem>>, vector<1x1x16x16xf32>,
    return
  }
  func.func @transform_0(%arg0: i32) -> (i32, i32, i32, i32) {
    %c0_i32 = arith.constant 0 : i32
    %c0_i32_0 = arith.constant 0 : i32
    %c0_i32_1 = arith.constant 0 : i32
    %c0_i32_2 = arith.constant 0 : i32
    return %arg0, %c0_i32, %c0_i32_0, %c0_i32_1 : i32, i32, i32, i32
  }
  func.func @transform_1(%arg0: i32) -> (i32, i32, i32, i32) {
    %c0_i32 = arith.constant 0 : i32
    %c0_i32_0 = arith.constant 0 : i32
    %c0_i32_1 = arith.constant 0 : i32
    %c0_i32_2 = arith.constant 0 : i32
    return %arg0, %c0_i32, %c0_i32_0, %c0_i32_1 : i32, i32, i32, i32
  }
  func.func @transform_2(%arg0: i32) -> (i32, i32, i32, i32) {
    %c0_i32 = arith.constant 0 : i32
    %c0_i32_0 = arith.constant 0 : i32
    %c0_i32_1 = arith.constant 0 : i32
    %c0_i32_2 = arith.constant 0 : i32
    return %arg0, %c0_i32, %c0_i32_0, %c0_i32_1 : i32, i32, i32, i32
  }
  func.func @transform_3(%arg0: i32) -> (i32, i32, i32, i32) {
    %c0_i32 = arith.constant 0 : i32
    %c0_i32_0 = arith.constant 0 : i32
    %c0_i32_1 = arith.constant 0 : i32
    %c0_i32_2 = arith.constant 0 : i32
    return %arg0, %c0_i32, %c0_i32_0, %c0_i32_1 : i32, i32, i32, i32
  }
  func.func @transform_4(%arg0: i32) -> (i32, i32, i32, i32) {
    %c0_i32 = arith.constant 0 : i32
    %c0_i32_0 = arith.constant 0 : i32
    %c0_i32_1 = arith.constant 0 : i32
    %c0_i32_2 = arith.constant 0 : i32
    return %arg0, %c0_i32, %c0_i32_0, %c0_i32_1 : i32, i32, i32, i32
  }
}

</mosaic_0001>

<bundles_post_ra>
// kernel: batched_lidia_forward.3
= control target key start
LH: loop header
LB: loop body
LE: loop exit
PB: predicated region body
PF: predicated region fallthrough
CT: control target
= control target key end

     0   :  { %s901_s0 = inlined_call_operand.vmem [shape: f32[2,3], index: 0, kind: input, shape index: {}]   ;;  %s902_s1 = inlined_call_operand.hbm [shape: f32[2,3,16,16], index: 1, kind: input, shape index: {}]   ;;  %s903_s2 = inlined_call_operand.vmem [shape: f32[2,1,16,16], index: 2, kind: input, shape index: {}]   ;;  %s904_s3 = inlined_call_operand.hbm [shape: f32[2,3,16,16], index: 3, kind: output, shape index: {}]  }
   0x1   :  { %905 = sst [smem:[#allocation11_spill]] %s901_s0 }
   0x2   :  { %8 = vsyncpa [#allocation5], 0 }
   0x3   :  { %9 = vsyncpa [#allocation3], 0 }
   0x4   :  { %11 = vsyncpa [#allocation3 + $0x1], 0 }
   0x5   :  { %12 = vsyncpa [#allocation4], 0 }
   0x6   :  { %14 = vsyncpa [#allocation4 + $0x1], 0  ;;  %s734_s12 = smov 0   ;;  %s736_s13 = smov 0  }
   0x7   :  { %s738_s14 = smov 0   ;;  %s740_s15 = smov 0  }
   0x8   :  { %s742_s16 = smov 0   ;;  %s744_s17 = smov 0  }
   0x9 LB: > { %s466_s18 = sadd.s32 4294967295, %s707_s17   ;;  %s467_s19 = sadd.s32 4294967294, %s707_s17   ;;  %s707_s17 = sphi %s744_s17, %s20_s17   ;;  %s703_s16 = sphi %s742_s16, %s918_s16   ;;  %s699_s15 = sphi %s740_s15, %s917_s15   ;;  %s695_s14 = sphi %s738_s14, %s916_s14   ;;  %s691_s13 = sphi %s736_s13, %s915_s13   ;;  %s687_s12 = sphi %s734_s12, %s914_s12  }
   0xa   : > { %s62_s20 = sadd.s32 1, %s695_s14  ;;  %p69_p0 = scmp.ne.s32.totalorder %s695_s14, %s691_s13 }
   0xb   : > { %p70_p1 = scmp.eq.s32.totalorder %s707_s17, 0  ;;  %p75_p2 = scmp.ne.s32.totalorder %s691_s13, %s687_s12 }
   0xc   : > { %p772_p3 = scmp.eq.s32.totalorder %s466_s18, 0  ;;  %p129_p4 = scmp.eq.s32.totalorder %s466_s18, 1 }
   0xd   : > { %p776_p5 = por %p70_p1, %p69_p0  ;;  %p135_p6 = scmp.eq.s32.totalorder %s467_s19, 1 }
   0xe   : > { %p782_p7 = por %p772_p3, %p75_p2  ;;  %p786_p8 = por %p129_p4, %p69_p0 }
   0xf   : > { %p790_p9 = por %p135_p6, %p75_p2  ;;  %p468_p10 = scmp.ge.s32.totalorder %s707_s17, 1 }
  0x10   : > { %p142_p11 = scmp.lt.s32.totalorder %s707_s17, 3  ;;  %s911_s0 = sld [smem:[#allocation11_spill]] }
  0x11   : > { %p470_p13 = scmp.ge.s32.totalorder %s707_s17, 2  ;;  %p520_p0 = scmp.lt.s32.totalorder %s707_s17, 2 }
  0x12   : > { %p799_p12 = pnand %p468_p10, %p142_p11  ;;  %s32_s4 = sadd.s32 1, %s703_s16 }
  0x13   : > { %p809_p2 = pnand %p520_p0, %p776_p5  ;;  %p34_p6 = scmp.ge.s32.totalorder %s32_s4, 2 }
  0x14   : > { %p507_p1 = pneg %p799_p12  ;;  %s165_s5 = sand.u32 1, %s695_s14  }
  0x15   : > { %s709_s6 = smov [#allocation2]   ;;  %s920_s4 = smov (%p34_p6, %s32_s4), 0 }
  0x16   : > { %s154_s28 = sshll.u32 %s911_s0, 4  ;;  %p508_p4 = pnand %p507_p1, %p772_p3  ;;  %s155_s28 = int_to_ptr.vmem [resolvable:$true] %s154_s28 }
  0x17   : > { %s495_s7 = smul.u32 48, %s165_s5  ;;  %s57_s8 = ssub.s32 %s703_s16, %s920_s4 }
  0x18   : > { %510 = dma.vmem_to_smem (!%p508_p4), %s155_s28, 32, %s709_s6, [#allocation5]  }
  0x19   : > { %s496_s9 = smul.u32 48, %s703_s16  ;;  %p60_p10 = scmp.eq.s32.totalorder %s57_s8, 0 }
  0x1a   : > { %s169_s19 = scalar_lea.vmem [#allocation6], %s495_s7  ;;  %s166_s28 = scalar_lea.sflag [#allocation3], %s165_s5 }
  0x1b   : > { %s176_s18 = scalar_lea.hbm %s902_s1, %s496_s9  ;;  %s179_s22 = sshll.u32 %s169_s19, 4  ;;  %s180_s22 = int_to_ptr.vmem [resolvable:$true] %s179_s22 }
  0x1c   : > { %s828_s26 = scalar_select %p60_p10, %s695_s14, %s62_s20  }
  0x1d   : > { %s177_s27 = sshll.u32 %s176_s18, 4  ;;  %s710_s6 = smov 128   ;;  %s178_s27 = int_to_ptr.hbm [resolvable:$true] %s177_s27 }
  0x1e   : > { %s711_s0 = smov 8   ;;  %204 = sbr.rel (%p799_p12) target bundleno = 71 (0x47), region = 32 }
  0x1f   : > { %514 = dma.hbm_to_vmem [thread:$0]  (!%p809_p2), %s178_s27, 768, %s180_s22, %s166_s28, %s710_s6, %s710_s6, %s711_s0  }
  0x23   : > { %674 = dma.done.wait (%p772_p3), [#allocation5], 32  }
  0x24   : > { %676 = vsyncadd (%p772_p3), [#allocation5], 4294967264  ;;  %s839_s20 = sand.u32 1, %s691_s13  }
  0x25   : > { %s497_s5 = smul.u32 48, %s839_s20  ;;  %s212_s7 = scalar_lea.sflag [#allocation3], %s839_s20 }
  0x27   : > { %s215_s0 = scalar_lea.vmem [#allocation6], %s497_s5 }
  0x28   : > { %678 = dma.done.wait (%p782_p7), %s212_s7, 768  }
  0x29   : > { %680 = vsyncadd (%p782_p7), %s212_s7, 4294966528 }
  0x2a   : > { %221 = sfence }
  0x2b   : > { %p251_p3 = scmp.lt.s32.totalorder %s699_s15, 1  ;;  %v265_v0 = vld [vmem:[%s215_s0] sm:$0xff]  ;;  %v266_v1 = vld [vmem:[%s215_s0 + $0x8] sm:$0xff]  ;;  %s476_s21 = sshll.u32 %s699_s15, 7  ;;  %v479_v2 = vld [vmem:[%s215_s0 + $0x10] sm:$0xff]  ;;  %vm282_vm0 = vcmask 130048  }
  0x2c   : > { %v480_v3 = vld [vmem:[%s215_s0 + $0x18] sm:$0xff]  ;;  %v477_v4 = vadd.f32 -0.5, %v265_v0  ;;  %v478_v5 = vadd.f32 -0.5, %v266_v1  ;;  %s264_s30 = sld [smem:[#allocation2 + %s476_s21]]  ;;  %s285_s9 = sadd.s32 1, %s476_s21  ;;  %v481_v6 = vadd.f32 -0.5, %v479_v2 }
  0x2d   : > { %s252_s29 = scalar_select %p251_p3, %s699_s15, 1  ;;  %v482_v7 = vadd.f32 -0.5, %v480_v3  ;;  %v485_v8 = vld [vmem:[%s215_s0 + $0x20] sm:$0xff]  ;;  %v486_v9 = vld [vmem:[%s215_s0 + $0x28] sm:$0xff] }
  0x2e   : > { %s286_s23 = sld [smem:[#allocation2 + %s285_s9]]  ;;  %v269_v10 = vmul.f32 2.0, %v477_v4  ;;  %v270_v11 = vmul.f32 2.0, %v478_v5  ;;  %s308_s19 = sadd.s32 2, %s476_s21  ;;  %v487_v12 = vadd.f32 -0.5, %v485_v8  ;;  %v488_v13 = vadd.f32 -0.5, %v486_v9 }
  0x2f   : > { %s494_s8 = sshll.u32 %s252_s29, 4  ;;  %s309_s22 = sld [smem:[#allocation2 + %s308_s19]]  ;;  %v292_v14 = vmul.f32 2.0, %v481_v6  ;;  %v293_v15 = vmul.f32 2.0, %v482_v7 }
  0x30   : > { %s258_s18 = scalar_lea.vmem %s903_s2, %s494_s8  ;;  %v315_v22 = vmul.f32 2.0, %v487_v12  ;;  %v316_v23 = vmul.f32 2.0, %v488_v13  ;;  %s498_s27 = smul.u32 48, %s699_s15 }
  0x31   : > { %v261_v16 = vld [vmem:[%s258_s18] sm:$0xff]  ;;  %v262_v18 = vld [vmem:[%s258_s18 + $0x8] sm:$0xff]  ;;  %s248_s0 = scalar_lea.vmem [#allocation7], %s497_s5  ;;  %s332_s5 = scalar_lea.sflag [#allocation4], %s839_s20 }
  0x32   : > { %v271_v17 = vstv %s264_s30  ;;  %s345_s7 = scalar_lea.hbm %s904_s3, %s498_s27  ;;  %s346_s15 = sshll.u32 %s248_s0, 4  ;;  %s347_s15 = int_to_ptr.vmem [resolvable:$true] %s346_s15 }
  0x33   : > { %v272_v19 = vsub.f32 %v269_v10, %v271_v17  ;;  %v273_v20 = vsub.f32 %v270_v11, %v271_v17  ;;  %s348_s21 = sshll.u32 %s345_s7, 4  ;;  %s349_s21 = int_to_ptr.hbm [resolvable:$true] %s348_s21 }
  0x34   : > { %v294_v21 = vstv %s286_s23  ;;  %s635_s29 = sshra.s32 %s349_s21, 4  ;;  %s641_s23 = scalar_lea.hbm %s904_s3, 96  ;;  %s636_s29 = int_to_ptr.hbm [resolvable:$true] %s635_s29 }
  0x35   : > { %v274_v24 = vmul.f32 %v272_v19, %v261_v16  ;;  %v275_v25 = vmul.f32 %v273_v20, %v262_v18  ;;  %v295_v26 = vsub.f32 %v292_v14, %v294_v21  ;;  %v296_v27 = vsub.f32 %v293_v15, %v294_v21  ;;  %s637_s30 = scalar_lea.hbm %s636_s29, 48  ;;  %p642_p12 = scmp.lt.s32.totalorder %s636_s29, %s904_s3 }
  0x36   : > { %v317_v28 = vstv %s309_s22  ;;  %p638_p5 = scmp.ne.s32.totalorder %s636_s29, %s637_s30  ;;  %p643_p0 = scmp.lt.s32.totalorder %s641_s23, %s637_s30 }
  0x37   : > { %v276_v29 = vadd.f32 %v274_v24, %v271_v17  ;;  %v277_v30 = vadd.f32 %v275_v25, %v271_v17  ;;  %v297_v31 = vmul.f32 %v295_v26, %v261_v16  ;;  %v298_v32 = vmul.f32 %v296_v27, %v262_v18 }
  0x38   : > { %v318_v33 = vsub.f32 %v315_v22, %v317_v28  ;;  %v319_v34 = vsub.f32 %v316_v23, %v317_v28  ;;  %p639_p7 = pnand %p638_p5, %p786_p8  ;;  %p644_p1 = por %p643_p0, %p642_p12 }
  0x39   : > { %v278_v35 = vmul.f32 0.5, %v276_v29  ;;  %v279_v36 = vmul.f32 0.5, %v277_v30  ;;  %v299_v37 = vadd.f32 %v297_v31, %v294_v21  ;;  %v300_v38 = vadd.f32 %v298_v32, %v294_v21 }
  0x3a   : > { %v320_v39 = vmul.f32 %v318_v33, %v261_v16  ;;  %v321_v40 = vmul.f32 %v319_v34, %v262_v18  ;;  %p640_p11 = pneg %p639_p7 }
  0x3b   : > { %v280_v41 = vadd.f32 0.5, %v278_v35  ;;  %v281_v42 = vadd.f32 0.5, %v279_v36  ;;  %v301_v43 = vmul.f32 0.5, %v299_v37  ;;  %v302_v44 = vmul.f32 0.5, %v300_v38 }
  0x3c   : > { %v322_v45 = vadd.f32 %v320_v39, %v317_v28  ;;  %v323_v46 = vadd.f32 %v321_v40, %v317_v28  ;;  %p645_p2 = pnand %p644_p1, %p640_p11 }
  0x3d   : > { %283 = vst.msk [vmem:[%s248_s0] sm:$0xff] %vm282_vm0, %v280_v41  ;;  %v303_v47 = vadd.f32 0.5, %v301_v43  ;;  %v304_v48 = vadd.f32 0.5, %v302_v44 }
  0x3e   : > { %284 = vst.msk [vmem:[%s248_s0 + $0x8] sm:$0xff] %vm282_vm0, %v281_v42  ;;  %v324_v49 = vmul.f32 0.5, %v322_v45  ;;  %v325_v50 = vmul.f32 0.5, %v323_v46 }
  0x3f   : > { %483 = vst.msk [vmem:[%s248_s0 + $0x10] sm:$0xff] %vm282_vm0, %v303_v47 }
  0x40   : > { %484 = vst.msk [vmem:[%s248_s0 + $0x18] sm:$0xff] %vm282_vm0, %v304_v48  ;;  %v326_v51 = vadd.f32 0.5, %v324_v49  ;;  %v327_v52 = vadd.f32 0.5, %v325_v50 }
  0x42   : > { %489 = vst.msk [vmem:[%s248_s0 + $0x20] sm:$0xff] %vm282_vm0, %v326_v51 }
  0x43   : > { %490 = vst.msk [vmem:[%s248_s0 + $0x28] sm:$0xff] %vm282_vm0, %v327_v52 }
  0x44   : > { %648 = shalt.err (!%p645_p2)
}
  0x45   : > { %s712_s20 = smov 128   ;;  %s713_s18 = smov 8  }
  0x46   : > { %505 = dma.vmem_to_hbm [thread:$0]  (%p786_p8), %s347_s15, 768, %s349_s21, %s332_s5, %s712_s20, %s712_s20, %s713_s18  }
  0x47 PF: > { %s363_s19 = sand.u32 1, %s687_s12   ;;  %p516_p4 = pnand %p470_p13, %p790_p9 }
  0x48   : > { %s364_s22 = scalar_lea.sflag [#allocation4], %s363_s19 }
  0x49   : > { %p517_p6 = pneg %p516_p4 }
  0x4b   : > { %682 = dma.done.wait (%p517_p6), %s364_s22, 768  }
  0x4c   : > { %684 = vsyncadd (%p517_p6), %s364_s22, 4294966528  ;;  %s20_s17 = sadd.s32 1, %s707_s17   ;;  %s914_s12 = smov %s691_s13 }
  0x4d   : > { %p17_p10 = scmp.ge.s32.totalorder %s20_s17, 4   ;;  %s915_s13 = smov %s695_s14 }
  0x4e   : > { %s916_s14 = smov %s828_s26  ;;  %s917_s15 = smov %s703_s16 }
  0x4f   : > { %s918_s16 = smov %s920_s4  ;;  %19 = sbr.rel (!%p17_p10) target bundleno = 9 (0x9), region = 89 }
  0x54   :  { %370 = vsyncpa [#allocation3], 1 }
  0x55   :  { %372 = vsyncpa [#allocation3 + $0x1], 1 }
  0x56   :  { %373 = vsyncpa [#allocation4], 1 }
  0x57   :  { %375 = vsyncpa [#allocation4 + $0x1], 1 }
  0x58   :  { %376 = vsyncpa [#allocation5], 1 }
  0x59   :  { %378 = vsyncpa [#allocation5 + $0x1], 1 }

// kernel: batched_lidia_forward.2
= control target key start
LH: loop header
LB: loop body
LE: loop exit
PB: predicated region body
PF: predicated region fallthrough
CT: control target
= control target key end

     0   :  { %10 = vsyncpa [#allocation5], 0  ;;  %s1197_s0 = inlined_call_operand.hbm [shape: f32[2,3,16,16], index: 0, kind: input, shape index: {}]   ;;  %s1198_s1 = inlined_call_operand.vmem [shape: f32[2,1,16,16], index: 1, kind: input, shape index: {}]   ;;  %s1199_s2 = inlined_call_operand.vmem [shape: f32[2,3,1,1], index: 2, kind: output, shape index: {0}]   ;;  %s1200_s3 = inlined_call_operand.vmem [shape: f32[2,1,16,16], index: 3, kind: output, shape index: {1}]   ;;  %s1201_s4 = inlined_call_operand.hbm [shape: f32[2,1,16,16], index: 4, kind: output, shape index: {2}]  }
   0x1   :  { %12 = vsyncpa [#allocation5 + $0x1], 0 }
   0x2   :  { %13 = vsyncpa [#allocation6], 0 }
   0x3   :  { %15 = vsyncpa [#allocation6 + $0x1], 0  ;;  %s979_s15 = smov 0   ;;  %s981_s16 = smov 0  }
   0x4   :  { %s983_s17 = smov 0   ;;  %s985_s18 = smov 0  }
   0x5 LB: > { %s1000_s19 = sadd.s32 4294967295, %s939_s18   ;;  %s738_s20 = sadd.s32 4294967294, %s939_s18   ;;  %s939_s18 = sphi %s985_s18, %s1209_s18   ;;  %s935_s17 = sphi %s983_s17, %s1208_s17   ;;  %s931_s16 = sphi %s981_s16, %s1207_s16   ;;  %s927_s15 = sphi %s979_s15, %s1206_s15  }
   0x6   : > { %s1004_s21 = sadd.s32 1, %s939_s18   ;;  %s28_s22 = sadd.s32 1, %s935_s17 }
   0x7   : > { %s25_s23 = ssub.s32 %s939_s18, %s1004_s21  ;;  %p35_p0 = scmp.ne.s32.totalorder %s935_s17, %s931_s16 }
   0x8   : > { %p26_p1 = scmp.eq.s32.totalorder %s25_s23, 0  ;;  %p36_p2 = scmp.eq.s32.totalorder %s939_s18, 0 }
   0x9   : > { %p41_p3 = scmp.ne.s32.totalorder %s931_s16, %s927_s15  ;;  %p42_p4 = scmp.eq.s32.totalorder %s1000_s19, 0 }
   0xa   : > { %s1016_s24 = scalar_select %p26_p1, %s935_s17, %s28_s22  }
   0xb   : > { %p37_p5 = por %p36_p2, %p35_p0  ;;  %p1018_p6 = por %p42_p4, %p41_p3 }
   0xc   : > { %p143_p7 = scmp.eq.s32.totalorder %s1000_s19, 1  ;;  %p149_p8 = scmp.eq.s32.totalorder %s738_s20, 1 }
   0xd   : > { %p740_p9 = scmp.ge.s32.totalorder %s939_s18, 2  ;;  %p790_p10 = scmp.lt.s32.totalorder %s939_s18, 2 }
   0xe   : > { %p1025_p11 = por %p143_p7, %p35_p0  ;;  %p1029_p12 = por %p149_p8, %p41_p3 }
   0xf   : > { %s169_s28 = sand.u32 1, %s935_s17   ;;  %s769_s29 = smul.u32 48, %s939_s18 }
  0x10   : > { %s768_s30 = smul.u32 48, %s169_s28  ;;  %p1038_p13 = pnand %p790_p10, %p37_p5 }
  0x11   : > { %s178_s7 = scalar_lea.hbm %s1197_s0, %s769_s29  ;;  %s170_s12 = scalar_lea.sflag [#allocation5], %s169_s28 }
  0x12   : > { %s179_s9 = sshll.u32 %s178_s7, 4  ;;  %s173_s10 = scalar_lea.vmem [#allocation4], %s768_s30  ;;  %s180_s9 = int_to_ptr.hbm [resolvable:$true] %s179_s9 }
  0x13   : > { %s181_s11 = sshll.u32 %s173_s10, 4  ;;  %s843_s13 = sshra.s32 %s180_s9, 4  ;;  %s182_s11 = int_to_ptr.vmem [resolvable:$true] %s181_s11  ;;  %s844_s13 = int_to_ptr.hbm [resolvable:$true] %s843_s13 }
  0x14   : > { %s845_s14 = scalar_lea.hbm %s844_s13, 48  ;;  %p847_p1 = pneg %p1038_p13 }
  0x15   : > { %p846_p0 = scmp.ne.s32.totalorder %s844_s13, %s845_s14  ;;  %s850_s23 = scalar_lea.hbm %s1197_s0, 96 }
  0x16   : > { %p851_p4 = scmp.lt.s32.totalorder %s844_s13, %s1197_s0  ;;  %p852_p5 = scmp.lt.s32.totalorder %s850_s23, %s845_s14 }
  0x17   : > { %p848_p2 = pnand %p847_p1, %p846_p0 }
  0x18   : > { %p853_p7 = por %p852_p5, %p851_p4 }
  0x19   : > { %p849_p3 = pneg %p848_p2 }
  0x1b   : > { %p854_p8 = pnand %p853_p7, %p849_p3 }
  0x1d   : > { %857 = shalt.err (!%p854_p8)
}
  0x1e   : > { %s941_s28 = smov 128   ;;  %s942_s30 = smov 8  }
  0x1f   : > { %785 = dma.hbm_to_vmem [thread:$0]  (!%p1038_p13), %s180_s9, 768, %s182_s11, %s170_s12, %s941_s28, %s941_s28, %s942_s30  }
  0x20   : > { %p742_p10 = scmp.ge.s32.totalorder %s939_s18, 1  ;;  %p197_p0 = scmp.lt.s32.totalorder %s939_s18, 3 }
  0x22   : > { %p198_p1 = pnand %p742_p10, %p197_p0 }
  0x23   : > { %s1055_s6 = sand.u32 (!%p198_p1), 1, %s931_s16  }
  0x24   : > { %201 = sbr.rel (%p198_p1) target bundleno = 583 (0x247), region = 28  ;;  %s204_s10 = scalar_lea.sflag (!%p198_p1), [#allocation5], %s1055_s6 }
  0x25   : > { %s770_s7 = smul.u32 (!%p198_p1), 48, %s1055_s6 }
  0x27   : > { %s207_s13 = scalar_lea.vmem (!%p198_p1), [#allocation4], %s770_s7 }
  0x29   : > { %918 = dma.done.wait (%p1018_p6), %s204_s10, 768  }
  0x2a   : > { %920 = vsyncadd (%p1018_p6), %s204_s10, 4294966528  ;;  %p247_p13 = scmp.lt.s32.totalorder %s1000_s19, 1  ;;  %vm267_vm0 = vcmask 130048   ;;  %v755_v1 = vld [vmem:[%s207_s13 + $0x20] sm:$0xff]  ;;  %v756_v2 = vld [vmem:[%s207_s13 + $0x28] sm:$0xff]  ;;  %s943_s25 = smov 2  }
  0x2b   : > { %v757_v3 = vadd.f32 -0.5, %v755_v1  ;;  %v758_v4 = vadd.f32 -0.5, %v756_v2  ;;  %v261_v5 = vld [vmem:[%s207_s13] sm:$0xff]  ;;  %v262_v6 = vld [vmem:[%s207_s13 + $0x8] sm:$0xff]  ;;  %v750_v7 = vld [vmem:[%s207_s13 + $0x10] sm:$0xff]  ;;  %vm475_vm1 = vcmask 162816  }
  0x2c   : > { %s1065_s8 = scalar_select %p247_p13, %s1000_s19, 1  ;;  %v748_v8 = vadd.f32 -0.5, %v261_v5  ;;  %v749_v9 = vadd.f32 -0.5, %v262_v6  ;;  %v751_v10 = vld [vmem:[%s207_s13 + $0x18] sm:$0xff]  ;;  %v752_v11 = vadd.f32 -0.5, %v750_v7  ;;  %vm478_vm2 = vcmask 158720  }
  0x2d   : > { %v1077_v12 = vmul.f32 2.0, %v757_v3  ;;  %v1079_v13 = vmul.f32 2.0, %v758_v4  ;;  %v753_v14 = vadd.f32 -0.5, %v751_v10  ;;  %v944_v15 = vmov 0.0   ;;  %s945_s20 = smov 127   ;;  %s946_s22 = smov 125  }
  0x2e   : > { %s765_s9 = sshll.u32 %s1065_s8, 4  ;;  %477 = vst.msk [vmem:[#allocation2 + $0x8] sm:$0xff] %vm475_vm1, %v944_v15  ;;  %v1082_v16 = vmul.f32 2.0, %v748_v8  ;;  %v1084_v17 = vmul.f32 2.0, %v749_v9  ;;  %v1090_v20 = vmul.f32 2.0, %v752_v11  ;;  %vm490_vm3 = vcmask 146448  }
  0x2f   : > { %s1073_s14 = scalar_lea.vmem %s1198_s1, %s765_s9  ;;  %479 = vst.msk [vmem:[#allocation2 + $0x10] sm:$0xf] %vm478_vm2, %v944_v15  ;;  %v333_v18 = vsel %vm267_vm0, %v1077_v12, 0.0  ;;  %v334_v19 = vsel %vm267_vm0, %v1079_v13, 0.0  ;;  %v1097_v24 = vmul.f32 2.0, %v753_v14  ;;  %s947_s23 = smov 124  }
  0x30   : > { %v481_v0 = vld [vmem:[%s1073_s14 + $0x8] sm:$0xff]  ;;  %476 = vst.msk [vmem:[#allocation2] sm:$0xff] %vm475_vm1, %v944_v15  ;;  %v335_v21 = vadd.f32 %v334_v19, %v333_v18  ;;  %v268_v22 = vsel %vm267_vm0, %v1082_v16, 0.0  ;;  %v269_v23 = vsel %vm267_vm0, %v1084_v17, 0.0  ;;  %v304_v26 = vsel %vm267_vm0, %v1090_v20, 0.0  ;;  %v480_v29 = vld [vmem:[%s1073_s14] sm:$0xff] }
  0x31   : > { %486 = vrot.lane.b32.xlu2 %v481_v0, %s943_s25  ;;  %v270_v25 = vadd.f32 %v269_v23, %v268_v22  ;;  %v305_v27 = vsel %vm267_vm0, %v1097_v24, 0.0  ;;  %v948_v55 = vmov 256.0   ;;  %s949_s29 = smov 126   ;;  %s771_s5 = smul.u32 3, %s1065_s8  ;;  %vm289_vm5 = vcmask 0  }
  0x32   : > { %336 = vadd.xlane.f32.xlu1 %v335_v21  ;;  %v306_v28 = vadd.f32 %v305_v27, %v304_v26  ;;  %837 = vrcp.f32 %v948_v55  ;;  %s950_s12 = smov 3   ;;  %s951_s14 = smov 1   ;;  %vm363_vm6 = vcmask 138248   ;;  %vm372_vm7 = vcmask 7168  }
  0x33   : > { %271 = vadd.xlane.f32.xlu0 %v270_v25  ;;  %s255_s10 = scalar_lea.vmem %s1199_s2, %s771_s5  ;;  %vm381_vm8 = vcmask 146568   ;;  %vm385_vm9 = vcmask 139264  }
  0x38   : > { %v838_v56 = vpop.eup %837 }
  0x39   : > { %v282_v57 = vmul.f32 256.0, %v838_v56  ;;  %vm286_vm4 = vweird.f32 %v838_v56 }
  0x3b   : > { %307 = vadd.xlane.f32.xlu0 %v306_v28  ;;  %v283_v58 = vsub.f32 1.0, %v282_v57 }
  0x3d   : > { %v284_v59 = vmul.f32 %v838_v56, %v283_v58 }
  0x3f   : > { %v285_v60 = vadd.f32 %v838_v56, %v284_v59 }
  0x41   : > { %v287_v61 = vsel %vm286_vm4, %v838_v56, %v285_v60 }
  0x4b   : > { %484 = vrot.lane.b32.xlu1 %v480_v29, %s943_s25 }
  0x8b   : > { %v487_v30 = vpop.permute.xlu2 %486 }
  0x8c   : > { %492 = vst.msk [vmem:[#allocation2 + $0xa] sm:$0xff] %vm490_vm3, %v487_v30 }
  0x93   : > { %v1106_v31 = vld [vmem:[#allocation2 + $0xa] sm:$0xff] }
  0x94   : > { %499 = vrot.lane.b32.xlu0 %v1106_v31, %s945_s20  ;;  %515 = vrot.lane.b32.xlu1 %v1106_v31, %s946_s22 }
  0xa5   : > { %v337_v32 = vpop.xlane.xlu1 %336 }
  0xa6   : > { %v338_v33 = vrot.slane %v337_v32, 4  ;;  %v272_v34 = vpop.xlane.xlu0 %271 }
  0xa7   : > { %v273_v35 = vrot.slane %v272_v34, 4 }
  0xa8   : > { %v339_v37 = vadd.f32 %v338_v33, %v337_v32 }
  0xa9   : > { %v274_v36 = vadd.f32 %v273_v35, %v272_v34 }
  0xaa   : > { %v340_v40 = vrot.slane %v339_v37, 2 }
  0xab   : > { %v275_v38 = vrot.slane %v274_v36, 2 }
  0xac   : > { %v341_v46 = vadd.f32 %v340_v40, %v339_v37 }
  0xad   : > { %v276_v39 = vadd.f32 %v275_v38, %v274_v36 }
  0xae   : > { %v308_v41 = vpop.xlane.xlu0 %307  ;;  %v342_v49 = vrot.slane %v341_v46, 1 }
  0xaf   : > { %v309_v42 = vrot.slane %v308_v41, 4  ;;  %v277_v43 = vrot.slane %v276_v39, 1 }
  0xb0   : > { %v343_v52 = vadd.f32 %v342_v49, %v341_v46 }
  0xb1   : > { %v310_v44 = vadd.f32 %v309_v42, %v308_v41  ;;  %v278_v45 = vadd.f32 %v277_v43, %v276_v39 }
  0xb3   : > { %v311_v47 = vrot.slane %v310_v44, 2  ;;  %772 = vpush %v278_v45 }
  0xb5   : > { %v312_v48 = vadd.f32 %v311_v47, %v310_v44 }
  0xb7   : > { %v313_v50 = vrot.slane %v312_v48, 1 }
  0xb9   : > { %v314_v51 = vadd.f32 %v313_v50, %v312_v48 }
  0xbb   : > { %774 = vpush %v314_v51 }
  0xbc   : > { %776 = vpush %v343_v52 }
  0xbd   : > { %v485_v53 = vpop.permute.xlu1 %484 }
  0xbe   : > { %491 = vst.msk [vmem:[#allocation2 + $0x2] sm:$0xff] %vm490_vm3, %v485_v53 }
  0xc5   : > { %v493_v54 = vld [vmem:[#allocation2 + $0x2] sm:$0xff] }
  0xc6   : > { %497 = vrot.lane.b32.xlu2 %v493_v54, %s945_s20  ;;  %521 = vrot.lane.b32.xlu0 %v493_v54, %s947_s23 }
  0xce   : > { %505 = vrot.lane.b32.xlu2 %v493_v54, %s949_s29 }
  0xd6   : > { %507 = vrot.lane.b32.xlu2 %v1106_v31, %s949_s29 }
  0xde   : > { %513 = vrot.lane.b32.xlu2 %v493_v54, %s946_s22 }
  0xe4   : > { %s773_s28 = spop %772 }
  0xe5   : > { %v280_v62 = vstv %s773_s28 }
  0xe6   : > { %523 = vrot.lane.b32.xlu2 %v1106_v31, %s947_s23  ;;  %v288_v63 = vmul.f32 %v287_v61, %v280_v62 }
  0xe8   : > { %290 = vst.msk [vmem:[%s255_s10] sm:$0x1] %vm289_vm5, %v288_v63  ;;  %v291_v0 = vsub.f32 %v1082_v16, %v288_v63  ;;  %v292_v8 = vsub.f32 %v1084_v17, %v288_v63 }
  0xea   : > { %v293_v5 = vmul.f32 0.2989, %v291_v0  ;;  %v294_v15 = vmul.f32 0.2989, %v292_v8 }
  0xec   : > { %s775_s13 = spop %774 }
  0xed   : > { %v316_v1 = vstv %s775_s13  ;;  %s777_s11 = spop %776 }
  0xee   : > { %v317_v2 = vmul.f32 %v316_v1, %v287_v61  ;;  %v345_v3 = vstv %s777_s11 }
  0xef   : > { %v346_v4 = vmul.f32 %v345_v3, %v287_v61 }
  0xf0   : > { %754 = vst.msk [vmem:[%s255_s10 + $0x1] sm:$0x1] %vm289_vm5, %v317_v2  ;;  %v320_v6 = vsub.f32 %v1090_v20, %v317_v2  ;;  %v321_v9 = vsub.f32 %v1097_v24, %v317_v2 }
  0xf1   : > { %759 = vst.msk [vmem:[%s255_s10 + $0x2] sm:$0x1] %vm289_vm5, %v346_v4  ;;  %v349_v7 = vsub.f32 %v1077_v12, %v346_v4  ;;  %v350_v19 = vsub.f32 %v1079_v13, %v346_v4 }
  0xf2   : > { %v322_v10 = vmul.f32 0.587, %v320_v6  ;;  %v323_v16 = vmul.f32 0.587, %v321_v9 }
  0xf3   : > { %v351_v11 = vmul.f32 0.114, %v349_v7  ;;  %v352_v12 = vmul.f32 0.114, %v350_v19 }
  0xf4   : > { %v324_v14 = vadd.f32 %v322_v10, %v293_v5  ;;  %v325_v20 = vadd.f32 %v323_v16, %v294_v15 }
  0xf6   : > { %v353_v18 = vadd.f32 %v351_v11, %v324_v14  ;;  %v354_v21 = vadd.f32 %v352_v12, %v325_v20 }
  0xf8   : > { %375 = vrot.lane.b32.xlu2 %v353_v18, %s950_s12  ;;  %366 = vrot.lane.b32.xlu0 %v353_v18, %s945_s20 }
  0xf9   : > { %357 = vrot.lane.b32.xlu1 %v353_v18, %s951_s14 }
 0x100   : > { %377 = vrot.lane.b32.xlu2 %v354_v21, %s950_s12  ;;  %368 = vrot.lane.b32.xlu0 %v354_v21, %s945_s20  ;;  %s893_s12 = scalar_lea.hbm %s1201_s4, 32 }
 0x101   : > { %359 = vrot.lane.b32.xlu1 %v354_v21, %s951_s14 }
 0x106   : > { %v500_v24 = vpop.permute.xlu0 %499  ;;  %v516_v33 = vpop.permute.xlu1 %515 }
 0x107   : > { %v504_v27 = vadd.f32 %v500_v24, %v1106_v31 }
 0x120   : > { %v498_v17 = vpop.permute.xlu2 %497 }
 0x121   : > { %v503_v25 = vadd.f32 %v498_v17, %v493_v54 }
 0x128   : > { %v506_v22 = vpop.permute.xlu2 %505 }
 0x129   : > { %v511_v26 = vadd.f32 %v506_v22, %v503_v25 }
 0x130   : > { %v508_v23 = vpop.permute.xlu2 %507 }
 0x131   : > { %v512_v30 = vadd.f32 %v508_v23, %v504_v27 }
 0x133   : > { %v520_v34 = vadd.f32 %v516_v33, %v512_v30 }
 0x138   : > { %v514_v13 = vpop.permute.xlu2 %513  ;;  %v522_v29 = vpop.permute.xlu0 %521 }
 0x139   : > { %v519_v28 = vadd.f32 %v514_v13, %v511_v26 }
 0x13b   : > { %v527_v32 = vadd.f32 %v522_v29, %v519_v28 }
 0x13d   : > { %531 = vrot.lane.b32.xlu1 %v527_v32, %s943_s25 }
 0x140   : > { %v524_v35 = vpop.permute.xlu2 %523 }
 0x141   : > { %v528_v36 = vadd.f32 %v524_v35, %v520_v34 }
 0x143   : > { %533 = vrot.lane.b32.xlu0 %v528_v36, %s943_s25  ;;  %s743_s25 = sshll.u32 %s1055_s6, 4 }
 0x144   : > { %s246_s5 = scalar_lea.vmem [#allocation7], %s743_s25 }
 0x145   : > { %s601_s28 = sshll.u32 %s246_s5, 4  ;;  %s602_s28 = int_to_ptr.vmem [resolvable:$true] %s601_s28 }
 0x152   : > { %v376_v38 = vpop.permute.xlu2 %375 }
 0x15a   : > { %v378_v41 = vpop.permute.xlu2 %377 }
 0x16a   : > { %v367_v37 = vpop.permute.xlu0 %366 }
 0x16b   : > { %v358_v39 = vpop.permute.xlu1 %357 }
 0x16c   : > { %364 = vst.msk [vmem:[#allocation3 + $0x1] sm:$0xff] %vm363_vm6, %v358_v39 }
 0x16d   : > { %373 = vst.msk [vmem:[#allocation3 + $0x1] sm:$0xff] %vm372_vm7, %v367_v37 }
 0x16e   : > { %382 = vst.msk [vmem:[#allocation3 + $0x1] sm:$0xff] %vm381_vm8, %v376_v38 }
 0x172   : > { %v369_v31 = vpop.permute.xlu0 %368 }
 0x173   : > { %v360_v40 = vpop.permute.xlu1 %359 }
 0x174   : > { %365 = vst.msk [vmem:[#allocation3 + $0x9] sm:$0xff] %vm363_vm6, %v360_v40 }
 0x175   : > { %374 = vst.msk [vmem:[#allocation3 + $0x9] sm:$0xff] %vm372_vm7, %v369_v31  ;;  %v384_v42 = vld [vmem:[#allocation3 + $0x2] sm:$0x1] }
 0x176   : > { %383 = vst.msk [vmem:[#allocation3 + $0x9] sm:$0xff] %vm381_vm8, %v378_v41  ;;  %v417_v50 = vld [vmem:[#allocation3 + $0x1] sm:$0xff] }
 0x177   : > { %386 = vst.msk [vmem:[#allocation3] sm:$0x1] %vm385_vm9, %v384_v42  ;;  %v423_v52 = vmul.f32 0.25, %v417_v50  ;;  %v419_v57 = vmul.f32 0.125, %v417_v50 }
 0x17d   : > { %v418_v43 = vld [vmem:[#allocation3 + $0x9] sm:$0xff] }
 0x17e   : > { %v390_v44 = vld [vmem:[#allocation3 + $0x8] sm:$0xff]  ;;  %v424_v45 = vmul.f32 0.25, %v418_v43  ;;  %v389_v49 = vld [vmem:[#allocation3] sm:$0xff]  ;;  %v420_v56 = vmul.f32 0.125, %v418_v43 }
 0x17f   : > { %v396_v46 = vmul.f32 0.125, %v390_v44  ;;  %v1134_v47 = vmul.f32 0.0625, %v390_v44  ;;  %v387_v48 = vld [vmem:[#allocation3 + $0xf] sm:$0x1]  ;;  %v391_v51 = vmul.f32 0.0625, %v389_v49  ;;  %v395_v53 = vmul.f32 0.125, %v389_v49 }
 0x180   : > { %429 = vrot.lane.b32.xlu0 %v424_v45, %s945_s20  ;;  %388 = vst.msk [vmem:[#allocation3 + $0x11] sm:$0x1] %vm385_vm9, %v387_v48  ;;  %v445_v54 = vld [vmem:[#allocation3 + $0x2] sm:$0xff] }
 0x181   : > { %401 = vrot.lane.b32.xlu1 %v396_v46, %s945_s20  ;;  %411 = vrot.lane.b32.xlu2 %v1134_v47, %s949_s29  ;;  %v451_v55 = vmul.f32 0.125, %v445_v54  ;;  %v447_v59 = vmul.f32 0.0625, %v445_v54 }
 0x187   : > { %v446_v58 = vld [vmem:[#allocation3 + $0xa] sm:$0xff] }
 0x188   : > { %409 = vrot.lane.b32.xlu0 %v391_v51, %s949_s29  ;;  %v448_v60 = vmul.f32 0.0625, %v446_v58  ;;  %v452_v61 = vmul.f32 0.125, %v446_v58 }
 0x189   : > { %427 = vrot.lane.b32.xlu1 %v423_v52, %s945_s20  ;;  %399 = vrot.lane.b32.xlu2 %v395_v53, %s945_s20 }
 0x190   : > { %455 = vrot.lane.b32.xlu0 %v451_v55, %s945_s20 }
 0x191   : > { %439 = vrot.lane.b32.xlu1 %v420_v56, %s949_s29  ;;  %437 = vrot.lane.b32.xlu2 %v419_v57, %s949_s29 }
 0x198   : > { %467 = vrot.lane.b32.xlu0 %v448_v60, %s949_s29 }
 0x199   : > { %465 = vrot.lane.b32.xlu1 %v447_v59, %s949_s29  ;;  %457 = vrot.lane.b32.xlu2 %v452_v61, %s945_s20  ;;  %s767_s20 = sshll.u32 %s1000_s19, 4  ;;  %s583_s19 = scalar_lea.sflag [#allocation6], %s1055_s6 }
 0x1af   : > { %v532_v62 = vpop.permute.xlu1 %531 }
 0x1b0   : > { %537 = vst.msk [vmem:[#allocation2 + $0x2] sm:$0xff] %vm490_vm3, %v532_v62 }
 0x1b5   : > { %v534_v63 = vpop.permute.xlu0 %533 }
 0x1b6   : > { %538 = vst.msk [vmem:[#allocation2 + $0xa] sm:$0xff] %vm490_vm3, %v534_v63 }
 0x1b7   : > { %v539_v0 = vld [vmem:[#allocation2] sm:$0xff] }
 0x1b8   : > { %v541_v1 = vld [vmem:[#allocation2 + $0x1] sm:$0xff] }
 0x1b9   : > { %v543_v2 = vadd.f32 %v541_v1, %v539_v0  ;;  %v545_v3 = vld [vmem:[#allocation2 + $0x2] sm:$0xff] }
 0x1bb   : > { %v547_v4 = vadd.f32 %v545_v3, %v543_v2 }
 0x1bd   : > { %v549_v5 = vld [vmem:[#allocation2 + $0x3] sm:$0xff]  ;;  %v550_v18 = vld [vmem:[#allocation2 + $0xb] sm:$0xff] }
 0x1be   : > { %v540_v6 = vld [vmem:[#allocation2 + $0x8] sm:$0xff]  ;;  %v551_v7 = vadd.f32 %v549_v5, %v547_v4 }
 0x1bf   : > { %v542_v8 = vld [vmem:[#allocation2 + $0x9] sm:$0xff] }
 0x1c0   : > { %v553_v9 = vld [vmem:[#allocation2 + $0x4] sm:$0xff]  ;;  %v544_v10 = vadd.f32 %v542_v8, %v540_v6  ;;  %v554_v20 = vld [vmem:[#allocation2 + $0xc] sm:$0xff] }
 0x1c1   : > { %v555_v11 = vadd.f32 %v553_v9, %v551_v7  ;;  %v546_v14 = vld [vmem:[#allocation2 + $0xa] sm:$0xff] }
 0x1c2   : > { %v548_v15 = vadd.f32 %v546_v14, %v544_v10 }
 0x1c3   : > { %v557_v16 = vadd.f32 1e-10, %v555_v11 }
 0x1c4   : > { %v552_v19 = vadd.f32 %v550_v18, %v548_v15 }
 0x1c5   : > { %839 = vrcp.f32 %v557_v16 }
 0x1c6   : > { %v556_v12 = vadd.f32 %v554_v20, %v552_v19 }
 0x1c8   : > { %v558_v21 = vadd.f32 1e-10, %v556_v12 }
 0x1ca   : > { %841 = vrcp.f32 %v558_v21 }
 0x1cb   : > { %v840_v17 = vpop.eup %839 }
 0x1cc   : > { %v561_v22 = vmul.f32 %v840_v17, %v555_v11 }
 0x1ce   : > { %565 = vrot.lane.b32.xlu2 %v561_v22, %s949_s29 }
 0x1d0   : > { %v842_v23 = vpop.eup %841 }
 0x1d1   : > { %v562_v24 = vmul.f32 %v842_v23, %v556_v12 }
 0x1d3   : > { %567 = vrot.lane.b32.xlu1 %v562_v24, %s949_s29  ;;  %s600_s29 = scalar_lea.hbm %s1201_s4, %s767_s20 }
 0x1d4   : > { %s603_s30 = sshll.u32 %s600_s29, 4  ;;  %s604_s30 = int_to_ptr.hbm [resolvable:$true] %s603_s30 }
 0x1d5   : > { %s887_s7 = sshra.s32 %s604_s30, 4  ;;  %s888_s7 = int_to_ptr.hbm [resolvable:$true] %s887_s7 }
 0x1d6   : > { %s889_s10 = scalar_lea.hbm %s888_s7, 16  ;;  %p894_p4 = scmp.lt.s32.totalorder %s888_s7, %s1201_s4 }
 0x1d7   : > { %p890_p6 = scmp.ne.s32.totalorder %s888_s7, %s889_s10  ;;  %p895_p5 = scmp.lt.s32.totalorder %s893_s12, %s889_s10 }
 0x1d9   : > { %p891_p2 = pnand %p890_p6, %p1025_p11  ;;  %p896_p7 = por %p895_p5, %p894_p4 }
 0x1db   : > { %v412_v25 = vpop.permute.xlu2 %411  ;;  %p892_p3 = pneg %p891_p2 }
 0x1dd   : > { %p897_p8 = pnand %p896_p7, %p892_p3 }
 0x1e3   : > { %v400_v27 = vpop.permute.xlu2 %399 }
 0x1e4   : > { %v405_v29 = vadd.f32 %v400_v27, %v391_v51 }
 0x1eb   : > { %v438_v37 = vpop.permute.xlu2 %437 }
 0x1f2   : > { %v430_v13 = vpop.permute.xlu0 %429 }
 0x1f3   : > { %v402_v26 = vpop.permute.xlu1 %401  ;;  %v458_v45 = vpop.permute.xlu2 %457 }
 0x1f4   : > { %v406_v28 = vadd.f32 %v402_v26, %v1134_v47 }
 0x1f6   : > { %v416_v30 = vadd.f32 %v412_v25, %v406_v28 }
 0x1f8   : > { %v422_v35 = vadd.f32 %v420_v56, %v416_v30 }
 0x1fa   : > { %v410_v33 = vpop.permute.xlu0 %409  ;;  %v434_v39 = vadd.f32 %v430_v13, %v422_v35 }
 0x1fb   : > { %v428_v32 = vpop.permute.xlu1 %427  ;;  %v415_v34 = vadd.f32 %v410_v33, %v405_v29 }
 0x1fd   : > { %v421_v36 = vadd.f32 %v419_v57, %v415_v34 }
 0x1ff   : > { %v433_v38 = vadd.f32 %v428_v32, %v421_v36 }
 0x201   : > { %v443_v31 = vadd.f32 %v438_v37, %v433_v38 }
 0x202   : > { %v456_v41 = vpop.permute.xlu0 %455 }
 0x203   : > { %v440_v40 = vpop.permute.xlu1 %439  ;;  %v449_v44 = vadd.f32 %v447_v59, %v443_v31 }
 0x204   : > { %v444_v42 = vadd.f32 %v440_v40, %v434_v39 }
 0x205   : > { %v461_v46 = vadd.f32 %v456_v41, %v449_v44 }
 0x206   : > { %v450_v43 = vadd.f32 %v448_v60, %v444_v42 }
 0x208   : > { %v462_v47 = vadd.f32 %v458_v45, %v450_v43 }
 0x20a   : > { %v468_v49 = vpop.permute.xlu0 %467 }
 0x20b   : > { %v466_v48 = vpop.permute.xlu1 %465  ;;  %v472_v51 = vadd.f32 %v468_v49, %v462_v47 }
 0x20c   : > { %v471_v50 = vadd.f32 %v466_v48, %v461_v46 }
 0x20d   : > { %474 = vst.msk [vmem:[%s246_s5 + $0x8] sm:$0xff] %vm267_vm0, %v472_v51 }
 0x20e   : > { %473 = vst.msk [vmem:[%s246_s5] sm:$0xff] %vm267_vm0, %v471_v50 }
 0x20f   : > { %900 = shalt.err (!%p897_p8)
}
 0x210   : > { %s952_s6 = smov 128   ;;  %s953_s20 = smov 8  }
 0x211   : > { %780 = dma.vmem_to_hbm [thread:$0]  (%p1025_p11), %s602_s28, 256, %s604_s30, %s583_s19, %s952_s6, %s952_s6, %s953_s20  }
 0x212   : > { %s260_s29 = scalar_lea.vmem %s1200_s3, %s765_s9 }
 0x228   : > { %v566_v52 = vpop.permute.xlu2 %565 }
 0x229   : > { %571 = vst.msk [vmem:[%s260_s29] sm:$0xff] %vm267_vm0, %v566_v52 }
 0x245   : > { %v568_v53 = vpop.permute.xlu1 %567 }
 0x246   : > { %572 = vst.msk [vmem:[%s260_s29 + $0x8] sm:$0xff] %vm267_vm0, %v568_v53 }
 0x247 PF: > { %s633_s5 = sand.u32 1, %s927_s15   ;;  %p787_p10 = pnand %p740_p9, %p1029_p12 }
 0x248   : > { %s634_s26 = scalar_lea.sflag [#allocation6], %s633_s5 }
 0x249   : > { %p788_p11 = pneg %p787_p10 }
 0x24b   : > { %922 = dma.done.wait (%p788_p11), %s634_s26, 256  }
 0x24c   : > { %924 = vsyncadd (%p788_p11), %s634_s26, 4294967040  ;;  %p18_p0 = scmp.ge.s32.totalorder %s1004_s21, 4   ;;  %s1206_s15 = smov %s931_s16 }
 0x24d   : > { %s1207_s16 = smov %s935_s17  ;;  %s1208_s17 = smov %s1016_s24 }
 0x24e   : > { %s1209_s18 = smov %s1004_s21  ;;  %20 = sbr.rel (!%p18_p0) target bundleno = 5 (0x5), region = 104 }
 0x253   :  { %640 = vsyncpa [#allocation5], 1 }
 0x254   :  { %642 = vsyncpa [#allocation5 + $0x1], 1 }
 0x255   :  { %643 = vsyncpa [#allocation6], 1 }
 0x256   :  { %645 = vsyncpa [#allocation6 + $0x1], 1 }

</bundles_post_ra>
